<compile_context>
chip_gen: v5e
topology: v5e:2x2
jax: 0.10.0
libtpu: 0.0.40
codegen_flags: <defaults>
</compile_context>

<pallas_src>
import jax
import jax.numpy as jnp
from jax.experimental import pallas as pl
from jax.experimental.pallas import tpu as pltpu


def attention_kernel(x_ref, w_ref, o_ref):
    # x_ref: (TB, T, D) block of batch elements (input dtype)
    # w_ref: (1, D)     row weight of Linear(D -> 1), f32
    # o_ref: (TB, D)    context vectors for this block
    xf = x_ref[...].astype(jnp.float32)                    # (TB, T, D), single cast
    w = w_ref[...]                                         # (1, D), f32

    # ---- scores: VPU multiply + lane (last-dim) reduction ----
    scores = jnp.sum(xf * w[None, :, :], axis=-1)          # (TB, T)
    # (bias omitted: softmax(s + c) == softmax(s))

    # ---- softmax over the time axis on a lane-major (TB, T) tile ----
    m = jnp.max(scores, axis=-1, keepdims=True)            # (TB, 1)
    e = jnp.exp(scores - m)                                 # (TB, T)
    denom = jnp.sum(e, axis=-1, keepdims=True)              # (TB, 1)
    weights = e * pl.reciprocal(denom, approx=True)         # (TB, T)

    # ---- context: broadcast-multiply + sublane (time) reduction ----
    ctx = jnp.sum(weights[:, :, None] * xf, axis=1)          # (TB, D), f32
    o_ref[...] = ctx.astype(o_ref.dtype)


def attention_forward(lstm_output, weight, bias=None, *, tb=None,
                      vmem_block_budget_bytes=4 << 20):
    """lstm_output: (B, T, D); weight: (1, D); bias: (1,) (unused) -> (B, D)."""
    B, T, D = lstm_output.shape
    itemsize = jnp.dtype(lstm_output.dtype).itemsize

    # Pick TB (batch rows per grid step): multiple of 8, capped by a per-block
    # VMEM budget (double-buffered by the pipeliner) and by the padded batch.
    if tb is None:
        rows = max(8, vmem_block_budget_bytes // max(1, T * D * itemsize))
        tb = int(min(256, (rows // 8) * 8))
    tb = max(8, (int(tb) // 8) * 8)
    b8 = ((B + 7) // 8) * 8
    tb = min(tb, b8)

    n_blocks = pl.cdiv(B, tb)
    B_pad = n_blocks * tb
    if B_pad != B:
        x = jnp.pad(lstm_output, ((0, B_pad - B), (0, 0), (0, 0)))
    else:
        x = lstm_output

    w_row = weight.reshape(1, D).astype(jnp.float32)
    # bias is intentionally not passed to the kernel (softmax shift-invariance).

    out = pl.pallas_call(
        attention_kernel,
        out_shape=jax.ShapeDtypeStruct((B_pad, D), lstm_output.dtype),
        grid_spec=pltpu.PrefetchScalarGridSpec(
            num_scalar_prefetch=0,
            grid=(n_blocks,),
            in_specs=[
                pl.BlockSpec((tb, T, D), lambda i: (i, 0, 0)),
                pl.BlockSpec((1, D), lambda i: (0, 0)),
            ],
            out_specs=pl.BlockSpec((tb, D), lambda i: (i, 0)),
        ),
        compiler_params=pltpu.CompilerParams(
            dimension_semantics=("parallel",),
            vmem_limit_bytes=64 << 20,
        ),
    )(x, w_row)
    return out[:B]


def attention_reference(lstm_output, weight, bias):
    scores = jnp.einsum("btd,od->bto", lstm_output, weight) + bias  # (B, T, 1)
    weights = jax.nn.softmax(scores, axis=1)                        # (B, T, 1)
    ctx = jnp.einsum("bto,btd->bod", weights, lstm_output)          # (B, 1, D)
    return ctx[:, 0, :]


if __name__ == "__main__":
    B, T, hidden = 2, 8, 16
    D = hidden * 2  # nn.Linear(hidden_dim * 2, 1)

    key = jax.random.PRNGKey(0)
    kx, kw, kb = jax.random.split(key, 3)
    lstm_output = jax.random.normal(kx, (B, T, D), dtype=jnp.float32)

    # Deterministic "nn.Linear(D, 1)" params (PyTorch shapes: weight (1, D), bias (1,))
    bound = 1.0 / jnp.sqrt(jnp.float32(D))
    weight = jax.random.uniform(kw, (1, D), jnp.float32, -bound, bound)
    bias = jax.random.uniform(kb, (1,), jnp.float32, -bound, bound)

    out = attention_forward(lstm_output, weight, bias)
    out = jax.block_until_ready(out)

    ref = attention_reference(lstm_output, weight, bias)
    assert out.shape == (B, D)
    # slightly relaxed tolerance: approx reciprocal in the softmax normalizer
    assert jnp.allclose(out, ref, atol=2e-3, rtol=2e-3)
    print("KERNEL_OK")
</pallas_src>

<mosaic_0001>
module attributes {stable_mosaic.version = 11 : i64} {
  func.func @attention_kernel(%arg0: i32, %arg1: memref<8x8x32xf32, #tpu.memory_space<vmem>>, %arg2: memref<1x32xf32, #tpu.memory_space<vmem>>, %arg3: memref<8x32xf32, #tpu.memory_space<vmem>>) attributes {dimension_semantics = [#tpu.dimension_semantics<parallel>], iteration_bounds = array<i64: 1>, scalar_prefetch = 0 : i64, scratch_operands = 0 : i64, tpu.core_type = #tpu.core_type<tc>, window_params = [{transform_indices = @transform_0, window_bounds = array<i64: 8, 8, 32>}, {pipeline_mode = #tpu.pipeline_mode<synchronous>, transform_indices = @transform_1, window_bounds = array<i64: 1, 32>}, {transform_indices = @transform_2, window_bounds = array<i64: 8, 32>}]} {
    %c0 = arith.constant 0 : index
    %c0_0 = arith.constant 0 : index
    %c0_1 = arith.constant 0 : index
    %0 = vector.load %arg1[%c0, %c0_0, %c0_1] : memref<8x8x32xf32, #tpu.memory_space<vmem>>, vector<8x8x32xf32>
    %c0_2 = arith.constant 0 : index
    %c0_3 = arith.constant 0 : index
    %1 = vector.load %arg2[%c0_2, %c0_3] : memref<1x32xf32, #tpu.memory_space<vmem>>, vector<1x32xf32>
    %2 = vector.shape_cast %1 : vector<1x32xf32> to vector<1x1x32xf32>
    %3 = vector.broadcast %2 : vector<1x1x32xf32> to vector<8x8x32xf32>
    %4 = arith.mulf %0, %3 : vector<8x8x32xf32>
    %cst = arith.constant dense<0.000000e+00> : vector<8x8xf32>
    %5 = vector.multi_reduction <add>, %4, %cst [2] : vector<8x8x32xf32> to vector<8x8xf32>
    %cst_4 = arith.constant dense<0xFF800000> : vector<8xf32>
    %6 = vector.multi_reduction <maximumf>, %5, %cst_4 [1] : vector<8x8xf32> to vector<8xf32>
    %7 = vector.shape_cast %6 : vector<8xf32> to vector<8x1xf32>
    %8 = vector.broadcast %7 : vector<8x1xf32> to vector<8x8xf32>
    %9 = arith.subf %5, %8 : vector<8x8xf32>
    %10 = math.exp %9 : vector<8x8xf32>
    %cst_5 = arith.constant dense<0.000000e+00> : vector<8xf32>
    %11 = vector.multi_reduction <add>, %10, %cst_5 [1] : vector<8x8xf32> to vector<8xf32>
    %12 = vector.shape_cast %11 : vector<8xf32> to vector<8x1xf32>
    %13 = tpu.reciprocal %12 {approx = true} : vector<8x1xf32> -> vector<8x1xf32>
    %14 = vector.broadcast %13 : vector<8x1xf32> to vector<8x8xf32>
    %15 = arith.mulf %10, %14 : vector<8x8xf32>
    %16 = vector.shape_cast %15 : vector<8x8xf32> to vector<8x8x1xf32>
    %17 = vector.broadcast %16 : vector<8x8x1xf32> to vector<8x8x32xf32>
    %18 = arith.mulf %17, %0 : vector<8x8x32xf32>
    %cst_6 = arith.constant dense<0.000000e+00> : vector<8x32xf32>
    %19 = vector.multi_reduction <add>, %18, %cst_6 [1] : vector<8x8x32xf32> to vector<8x32xf32>
    %c0_7 = arith.constant 0 : index
    %c0_8 = arith.constant 0 : index
    %20 = vector.load %arg3[%c0_7, %c0_8] : memref<8x32xf32, #tpu.memory_space<vmem>>, vector<8x32xf32>
    tpu.vector_store %arg3[%c0_7, %c0_8], %19 {strides = array<i32>} : memref<8x32xf32, #tpu.memory_space<vmem>>, vector<8x32xf32>,
    return
  }
  func.func @transform_0(%arg0: i32) -> (i32, i32, i32) {
    %c0_i32 = arith.constant 0 : i32
    %c0_i32_0 = arith.constant 0 : i32
    %c0_i32_1 = arith.constant 0 : i32
    return %arg0, %c0_i32, %c0_i32_0 : i32, i32, i32
  }
  func.func @transform_1(%arg0: i32) -> (i32, i32) {
    %c0_i32 = arith.constant 0 : i32
    %c0_i32_0 = arith.constant 0 : i32
    %c0_i32_1 = arith.constant 0 : i32
    return %c0_i32, %c0_i32_0 : i32, i32
  }
  func.func @transform_2(%arg0: i32) -> (i32, i32) {
    %c0_i32 = arith.constant 0 : i32
    %c0_i32_0 = arith.constant 0 : i32
    return %arg0, %c0_i32 : i32, i32
  }
}

</mosaic_0001>

<bundles_post_ra>
// kernel: tpu_custom_call.1
= control target key start
LH: loop header
LB: loop body
LE: loop exit
PB: predicated region body
PF: predicated region fallthrough
CT: control target
= control target key end

     0   :  { %7 = vsyncpa [#allocation3], 0  ;;  %s611_s0 = inlined_call_operand.hbm [shape: f32[8,8,32], index: 0, kind: input, shape index: {}]   ;;  %s612_s1 = inlined_call_operand.hbm [shape: f32[1,32], index: 1, kind: input, shape index: {}]   ;;  %s613_s2 = inlined_call_operand.hbm [shape: f32[8,32], index: 2, kind: output, shape index: {}]  }
   0x1   :  { %8 = vsyncpa [#allocation6], 0 }
   0x2   :  { %9 = vsyncpa [#allocation4], 0  ;;  %s14_s11 = sshll.u32 %s611_s0, 4  ;;  %s487_s12 = smov [#allocation2]   ;;  %s15_s11 = int_to_ptr.hbm [resolvable:$true] %s14_s11 }
   0x3   :  { %s16_s13 = sshll.u32 %s487_s12, 4  ;;  %s28_s16 = sshll.u32 %s612_s1, 4  ;;  %s17_s13 = int_to_ptr.vmem [resolvable:$true] %s16_s13  ;;  %s29_s16 = int_to_ptr.hbm [resolvable:$true] %s28_s16 }
   0x4   :  { %s488_s17 = smov 128   ;;  %s489_s18 = smov 8  }
   0x5   :  { %22 = dma.hbm_to_vmem [thread:$0]  %s15_s11, 1024, %s17_s13, [#allocation3], %s488_s17, %s488_s17, %s489_s18  }
   0x6   :  { %s490_s19 = smov [#allocation5]  }
   0x7   :  { %s30_s20 = sshll.u32 %s490_s19, 4  ;;  %s31_s20 = int_to_ptr.vmem [resolvable:$true] %s30_s20 }
   0x8   :  { %33 = dma.hbm_to_vmem [thread:$0]  %s29_s16, 16, %s31_s20, [#allocation6]  }
   0x9   :  { %481 = dma.done.wait [#allocation3], 1024  }
   0xa   :  { %482 = vsyncadd [#allocation3], 4294966272 }
   0xb   :  { %483 = dma.done.wait [#allocation6], 16  }
   0xc   :  { %484 = vsyncadd [#allocation6], 4294967280  ;;  %v514_v0 = vld [vmem:[#allocation2] sm:$0xff]  ;;  %vm62_vm0 = vcmask 261120   ;;  %v516_v2 = vld [vmem:[#allocation2 + $0x10] sm:$0xff]  ;;  %v95_v27 = vlaneseq  ;;  %vm105_vm1 = vcmask 1041409  }
   0xd   :  { %v390_v1 = vld [vmem:[#allocation5] ss:$0 sm:$0xff]  ;;  %v523_v7 = vld [vmem:[#allocation2 + $0x8] sm:$0xff]  ;;  %v525_v8 = vld [vmem:[#allocation2 + $0x18] sm:$0xff]  ;;  %vm107_vm2 = vcmask 1042434   ;;  %vm109_vm3 = vcmask 1043459  }
   0xe   :  { %v518_v3 = vld [vmem:[#allocation2 + $0x20] sm:$0xff]  ;;  %v54_v4 = vmul.f32 %v390_v1, %v514_v0  ;;  %v56_v5 = vmul.f32 %v390_v1, %v516_v2  ;;  %v530_v12 = vld [vmem:[#allocation2 + $0x28] sm:$0xff]  ;;  %v55_v13 = vmul.f32 %v390_v1, %v523_v7  ;;  %v57_v14 = vmul.f32 %v390_v1, %v525_v8  ;;  %v538_v19 = vld [vmem:[#allocation2 + $0x30] sm:$0xff]  ;;  %s492_s0 = smov [#allocation7]   ;;  %s370_s23 = sshll.u32 %s613_s2, 4  ;;  %s371_s23 = int_to_ptr.hbm [resolvable:$true] %s370_s23 }
   0xf   :  { %v58_v6 = vmul.f32 %v390_v1, %v518_v3  ;;  %v59_v15 = vmul.f32 %v390_v1, %v530_v12  ;;  %v540_v20 = vld [vmem:[#allocation2 + $0x38] sm:$0xff]  ;;  %v60_v21 = vmul.f32 %v390_v1, %v538_v19  ;;  %v546_v29 = vand.u32 127, %v95_v27  ;;  %s368_s1 = sshll.u32 %s492_s0, 4  ;;  %s369_s1 = int_to_ptr.vmem [resolvable:$true] %s368_s1 }
  0x10   :  { %v63_v9 = vsel %vm62_vm0, %v54_v4, 0.0  ;;  %v69_v10 = vsel %vm62_vm0, %v56_v5, 0.0  ;;  %v66_v16 = vsel %vm62_vm0, %v55_v13, 0.0  ;;  %v72_v17 = vsel %vm62_vm0, %v57_v14, 0.0 }
  0x11   :  { %v75_v11 = vsel %vm62_vm0, %v58_v6, 0.0  ;;  %64 = vadd.xlane.f32.xlu0 %v63_v9  ;;  %70 = vadd.xlane.f32.xlu1 %v69_v10  ;;  %v78_v18 = vsel %vm62_vm0, %v59_v15, 0.0  ;;  %v61_v22 = vmul.f32 %v390_v1, %v540_v20  ;;  %v81_v23 = vsel %vm62_vm0, %v60_v21, 0.0 }
  0x12   :  { %76 = vadd.xlane.f32.xlu2 %v75_v11  ;;  %vm111_vm4 = vcmask 1044484   ;;  %vm113_vm5 = vcmask 1045509   ;;  %vm115_vm6 = vcmask 1046534   ;;  %vm117_vm7 = vcmask 1047559  }
  0x13   :  { %v84_v24 = vsel %vm62_vm0, %v61_v22, 0.0  ;;  %vm120_vm8 = vcmask 64512   ;;  %v491_v51 = vmov 0  }
  0x14   :  { %389 = vset.pattern.permute.xlu2 %v491_v51  ;;  %388 = vset.pattern.permute.xlu1 %v491_v51 }
  0x15   :  { %387 = vset.pattern.permute.xlu0 %v491_v51 }
  0x19   :  { %67 = vadd.xlane.f32.xlu0 %v66_v16  ;;  %73 = vadd.xlane.f32.xlu1 %v72_v17 }
  0x1a   :  { %79 = vadd.xlane.f32.xlu2 %v78_v18 }
  0x21   :  { %82 = vadd.xlane.f32.xlu0 %v81_v23  ;;  %85 = vadd.xlane.f32.xlu1 %v84_v24 }
  0x84   :  { %v65_v25 = vpop.xlane.xlu0 %64  ;;  %v71_v26 = vpop.xlane.xlu1 %70 }
  0x85   :  { %v77_v28 = vpop.xlane.xlu2 %76  ;;  %v97_v32 = vperm.slane %v65_v25, %v546_v29  ;;  %v99_v35 = vperm.slane %v71_v26, %v546_v29 }
  0x86   :  { %v101_v39 = vperm.slane %v77_v28, %v546_v29 }
  0x8c   :  { %v68_v30 = vpop.xlane.xlu0 %67  ;;  %v74_v31 = vpop.xlane.xlu1 %73 }
  0x8d   :  { %v98_v33 = vperm.slane %v68_v30, %v546_v29  ;;  %v100_v34 = vperm.slane %v74_v31, %v546_v29  ;;  %v80_v37 = vpop.xlane.xlu2 %79 }
  0x8e   :  { %v102_v41 = vperm.slane %v80_v37, %v546_v29 }
  0x8f   :  { %v106_v36 = vsel %vm105_vm1, %v98_v33, %v97_v32 }
  0x90   :  { %v108_v38 = vsel %vm107_vm2, %v99_v35, %v106_v36 }
  0x91   :  { %v110_v40 = vsel %vm109_vm3, %v100_v34, %v108_v38 }
  0x92   :  { %v112_v42 = vsel %vm111_vm4, %v101_v39, %v110_v40 }
  0x93   :  { %v114_v47 = vsel %vm113_vm5, %v102_v41, %v112_v42 }
  0x94   :  { %v83_v43 = vpop.xlane.xlu0 %82  ;;  %v86_v44 = vpop.xlane.xlu1 %85 }
  0x95   :  { %v103_v45 = vperm.slane %v83_v43, %v546_v29  ;;  %v104_v46 = vperm.slane %v86_v44, %v546_v29 }
  0x97   :  { %v116_v48 = vsel %vm115_vm6, %v103_v45, %v114_v47 }
  0x98   :  { %v118_v49 = vsel %vm117_vm7, %v104_v46, %v116_v48 }
  0x99   :  { %v121_v50 = vsel %vm120_vm8, %v118_v49, -inf }
  0x9a   :  { %122 = vmax.xlane.f32.xlu2 %v121_v50 }
 0x10d   :  { %v123_v52 = vpop.xlane.xlu2 %122 }
 0x10e   :  { %v127_v53 = vperm.slane %v123_v52, 2  ;;  %v126_v54 = vperm.slane %v123_v52, 1  ;;  %v125_v55 = vperm.slane %v123_v52, 0  ;;  %v128_v59 = vperm.slane %v123_v52, 3 }
 0x10f   :  { %v129_v60 = vperm.slane %v123_v52, 4  ;;  %v132_v61 = vperm.slane %v123_v52, 7  ;;  %v130_v10 = vperm.slane %v123_v52, 5  ;;  %v131_v13 = vperm.slane %v123_v52, 6 }
 0x110   :  { %v143_v56 = vsub.f32 %v71_v26, %v127_v53  ;;  %v142_v57 = vsub.f32 %v68_v30, %v126_v54  ;;  %v141_v58 = vsub.f32 %v65_v25, %v125_v55  ;;  %v144_v4 = vsub.f32 %v74_v31, %v128_v59 }
 0x111   :  { %v145_v5 = vsub.f32 %v77_v28, %v129_v60  ;;  %v148_v6 = vsub.f32 %v86_v44, %v132_v61  ;;  %v146_v18 = vsub.f32 %v80_v37, %v130_v10  ;;  %v147_v21 = vsub.f32 %v83_v43, %v131_v13 }
 0x112   :  { %v153_v62 = vmul.f32 1.442695, %v143_v56  ;;  %v151_v63 = vmul.f32 1.442695, %v142_v57  ;;  %v149_v1 = vmul.f32 1.442695, %v141_v58 }
 0x113   :  { %v155_v9 = vmul.f32 1.442695, %v144_v4  ;;  %v157_v11 = vmul.f32 1.442695, %v145_v5  ;;  %v163_v15 = vmul.f32 1.442695, %v148_v6 }
 0x114   :  { %391 = vpow2.f32 %v153_v62  ;;  %v159_v22 = vmul.f32 1.442695, %v146_v18  ;;  %v161_v23 = vmul.f32 1.442695, %v147_v21 }
 0x115   :  { %393 = vpow2.f32 %v151_v63 }
 0x116   :  { %395 = vpow2.f32 %v149_v1 }
 0x117   :  { %397 = vpow2.f32 %v155_v9 }
 0x118   :  { %399 = vpow2.f32 %v157_v11 }
 0x119   :  { %401 = vpow2.f32 %v163_v15 }
 0x11a   :  { %v564_v14 = vpop.eup %391  ;;  %403 = vpow2.f32 %v159_v22 }
 0x11b   :  { %v394_v16 = vpop.eup %393  ;;  %180 = vperm.xlu2 %389, %v564_v14   ;;  %405 = vpow2.f32 %v161_v23 }
 0x11c   :  { %v396_v17 = vpop.eup %395  ;;  %177 = vperm.xlu1 %388, %v394_v16  }
 0x11d   :  { %174 = vperm.xlu0 %387, %v396_v17   ;;  %v398_v24 = vpop.eup %397 }
 0x11e   :  { %v400_v25 = vpop.eup %399 }
 0x11f   :  { %v402_v26 = vpop.eup %401 }
 0x120   :  { %v404_v27 = vpop.eup %403 }
 0x121   :  { %v406_v28 = vpop.eup %405 }
 0x123   :  { %183 = vperm.xlu2 %389, %v398_v24  }
 0x124   :  { %186 = vperm.xlu1 %388, %v400_v25  }
 0x125   :  { %195 = vperm.xlu0 %387, %v402_v26  }
 0x12b   :  { %189 = vperm.xlu2 %389, %v404_v27  }
 0x12c   :  { %192 = vperm.xlu1 %388, %v406_v28  }
 0x175   :  { %v181_v30 = vpop.permute.xlu2 %180 }
 0x176   :  { %v199_v38 = vperm.slane %v181_v30, %v546_v29 }
 0x17d   :  { %v184_v33 = vpop.permute.xlu2 %183 }
 0x17e   :  { %v200_v41 = vperm.slane %v184_v33, %v546_v29 }
 0x185   :  { %v190_v42 = vpop.permute.xlu2 %189 }
 0x186   :  { %v202_v46 = vperm.slane %v190_v42, %v546_v29 }
 0x18e   :  { %v178_v31 = vpop.permute.xlu1 %177 }
 0x18f   :  { %v175_v32 = vpop.permute.xlu0 %174  ;;  %v198_v34 = vperm.slane %v178_v31, %v546_v29 }
 0x190   :  { %v197_v35 = vperm.slane %v175_v32, %v546_v29 }
 0x192   :  { %v205_v36 = vsel %vm105_vm1, %v198_v34, %v197_v35 }
 0x193   :  { %v206_v39 = vsel %vm107_vm2, %v199_v38, %v205_v36 }
 0x194   :  { %v207_v43 = vsel %vm109_vm3, %v200_v41, %v206_v39 }
 0x196   :  { %v187_v37 = vpop.permute.xlu1 %186 }
 0x197   :  { %v201_v40 = vperm.slane %v187_v37, %v546_v29  ;;  %v196_v45 = vpop.permute.xlu0 %195 }
 0x198   :  { %v204_v49 = vperm.slane %v196_v45, %v546_v29 }
 0x199   :  { %v208_v44 = vsel %vm111_vm4, %v201_v40, %v207_v43 }
 0x19a   :  { %v209_v50 = vsel %vm113_vm5, %v202_v46, %v208_v44 }
 0x19e   :  { %v193_v47 = vpop.permute.xlu1 %192 }
 0x19f   :  { %v203_v48 = vperm.slane %v193_v47, %v546_v29 }
 0x1a1   :  { %v210_v51 = vsel %vm115_vm6, %v203_v48, %v209_v50 }
 0x1a2   :  { %v211_v52 = vsel %vm117_vm7, %v204_v49, %v210_v51 }
 0x1a3   :  { %v213_v53 = vsel %vm120_vm8, %v211_v52, 0.0 }
 0x1a4   :  { %214 = vadd.xlane.f32.xlu2 %v213_v53 }
 0x217   :  { %v215_v54 = vpop.xlane.xlu2 %214 }
 0x218   :  { %407 = vrcp.f32 %v215_v54 }
 0x21e   :  { %v408_v55 = vpop.eup %407 }
 0x21f   :  { %v219_v56 = vperm.slane %v408_v55, 1  ;;  %v218_v57 = vperm.slane %v408_v55, 0  ;;  %v221_v60 = vperm.slane %v408_v55, 3  ;;  %v220_v29 = vperm.slane %v408_v55, 2 }
 0x220   :  { %v223_v63 = vperm.slane %v408_v55, 5  ;;  %v222_v1 = vperm.slane %v408_v55, 4  ;;  %v225_v6 = vperm.slane %v408_v55, 7  ;;  %v224_v9 = vperm.slane %v408_v55, 6 }
 0x221   :  { %v235_v58 = vmul.f32 %v394_v16, %v219_v56  ;;  %v234_v59 = vmul.f32 %v396_v17, %v218_v57  ;;  %v237_v61 = vmul.f32 %v398_v24, %v221_v60  ;;  %v236_v62 = vmul.f32 %v564_v14, %v220_v29 }
 0x222   :  { %v239_v4 = vmul.f32 %v404_v27, %v223_v63  ;;  %v238_v5 = vmul.f32 %v400_v25, %v222_v1  ;;  %v241_v10 = vmul.f32 %v402_v26, %v225_v6  ;;  %v240_v11 = vmul.f32 %v406_v28, %v224_v9 }
 0x223   :  { %249 = vperm.xlu0 %387, %v235_v58   ;;  %244 = vperm.xlu1 %388, %v234_v59  }
 0x22b   :  { %259 = vperm.xlu0 %387, %v237_v61   ;;  %254 = vperm.xlu1 %388, %v236_v62  }
 0x233   :  { %269 = vperm.xlu0 %387, %v239_v4   ;;  %264 = vperm.xlu1 %388, %v238_v5  }
 0x23b   :  { %279 = vperm.xlu0 %387, %v241_v10   ;;  %274 = vperm.xlu1 %388, %v240_v11  }
 0x295   :  { %v250_v13 = vpop.permute.xlu0 %249  ;;  %v245_v15 = vpop.permute.xlu1 %244 }
 0x296   :  { %v283_v16 = vmul.f32 %v250_v13, %v523_v7  ;;  %v282_v14 = vmul.f32 %v245_v15, %v514_v0 }
 0x298   :  { %v297_v17 = vsel %vm62_vm0, %v283_v16, 0.0  ;;  %v290_v18 = vsel %vm62_vm0, %v282_v14, 0.0 }
 0x299   :  { %v298_v21 = vrot.slane %v297_v17, 4  ;;  %v291_v22 = vrot.slane %v290_v18, 4 }
 0x29b   :  { %v299_v27 = vadd.f32 %v298_v21, %v297_v17  ;;  %v292_v28 = vadd.f32 %v291_v22, %v290_v18 }
 0x29d   :  { %v260_v23 = vpop.permute.xlu0 %259  ;;  %v255_v24 = vpop.permute.xlu1 %254  ;;  %v300_v32 = vrot.slane %v299_v27, 2  ;;  %v293_v33 = vrot.slane %v292_v28, 2 }
 0x29e   :  { %v285_v25 = vmul.f32 %v260_v23, %v525_v8  ;;  %v284_v26 = vmul.f32 %v255_v24, %v516_v2 }
 0x29f   :  { %v301_v2 = vadd.f32 %v300_v32, %v299_v27  ;;  %v294_v40 = vadd.f32 %v293_v33, %v292_v28 }
 0x2a0   :  { %v311_v30 = vsel %vm62_vm0, %v285_v25, 0.0  ;;  %v304_v7 = vsel %vm62_vm0, %v284_v26, 0.0 }
 0x2a1   :  { %v312_v31 = vrot.slane %v311_v30, 4  ;;  %v305_v0 = vrot.slane %v304_v7, 4  ;;  %v302_v47 = vrot.slane %v301_v2, 1  ;;  %v295_v48 = vrot.slane %v294_v40, 1 }
 0x2a3   :  { %v306_v34 = vadd.f32 %v305_v0, %v304_v7  ;;  %v313_v35 = vadd.f32 %v312_v31, %v311_v30  ;;  %v303_v57 = vadd.f32 %v302_v47, %v301_v2  ;;  %v296_v58 = vadd.f32 %v295_v48, %v294_v40 }
 0x2a5   :  { %v307_v36 = vrot.slane %v306_v34, 2  ;;  %v270_v37 = vpop.permute.xlu0 %269  ;;  %v265_v38 = vpop.permute.xlu1 %264  ;;  %v314_v41 = vrot.slane %v313_v35, 2  ;;  %v354_v10 = vsel %vm105_vm1, %v303_v57, %v296_v58 }
 0x2a6   :  { %v287_v39 = vmul.f32 %v270_v37, %v530_v12  ;;  %v286_v8 = vmul.f32 %v265_v38, %v518_v3 }
 0x2a7   :  { %v308_v44 = vadd.f32 %v307_v36, %v306_v34  ;;  %v315_v51 = vadd.f32 %v314_v41, %v313_v35 }
 0x2a8   :  { %v325_v42 = vsel %vm62_vm0, %v287_v39, 0.0  ;;  %v318_v43 = vsel %vm62_vm0, %v286_v8, 0.0 }
 0x2a9   :  { %v326_v45 = vrot.slane %v325_v42, 4  ;;  %v319_v46 = vrot.slane %v318_v43, 4  ;;  %v309_v52 = vrot.slane %v308_v44, 1  ;;  %v316_v60 = vrot.slane %v315_v51, 1 }
 0x2ab   :  { %v327_v49 = vadd.f32 %v326_v45, %v325_v42  ;;  %v320_v50 = vadd.f32 %v319_v46, %v318_v43  ;;  %v310_v63 = vadd.f32 %v309_v52, %v308_v44 }
 0x2ad   :  { %v328_v53 = vrot.slane %v327_v49, 2  ;;  %v321_v12 = vrot.slane %v320_v50, 2  ;;  %v280_v54 = vpop.permute.xlu0 %279  ;;  %v275_v3 = vpop.permute.xlu1 %274 }
 0x2ae   :  { %v289_v55 = vmul.f32 %v280_v54, %v540_v20  ;;  %v288_v56 = vmul.f32 %v275_v3, %v538_v19  ;;  %v317_v20 = vadd.f32 %v316_v60, %v315_v51  ;;  %v355_v19 = vsel %vm107_vm2, %v310_v63, %v354_v10 }
 0x2af   :  { %v322_v59 = vadd.f32 %v321_v12, %v320_v50  ;;  %v329_v29 = vadd.f32 %v328_v53, %v327_v49 }
 0x2b0   :  { %v339_v61 = vsel %vm62_vm0, %v289_v55, 0.0  ;;  %v332_v62 = vsel %vm62_vm0, %v288_v56, 0.0  ;;  %v356_v21 = vsel %vm109_vm3, %v317_v20, %v355_v19 }
 0x2b1   :  { %v323_v1 = vrot.slane %v322_v59, 1  ;;  %v340_v4 = vrot.slane %v339_v61, 4  ;;  %v333_v5 = vrot.slane %v332_v62, 4  ;;  %v330_v11 = vrot.slane %v329_v29, 1 }
 0x2b3   :  { %v341_v6 = vadd.f32 %v340_v4, %v339_v61  ;;  %v334_v9 = vadd.f32 %v333_v5, %v332_v62  ;;  %v324_v13 = vadd.f32 %v323_v1, %v322_v59  ;;  %v331_v18 = vadd.f32 %v330_v11, %v329_v29 }
 0x2b5   :  { %v342_v15 = vrot.slane %v341_v6, 2  ;;  %v335_v16 = vrot.slane %v334_v9, 2  ;;  %v357_v22 = vsel %vm111_vm4, %v324_v13, %v356_v21 }
 0x2b6   :  { %v358_v27 = vsel %vm113_vm5, %v331_v18, %v357_v22 }
 0x2b7   :  { %v343_v14 = vadd.f32 %v342_v15, %v341_v6  ;;  %v336_v17 = vadd.f32 %v335_v16, %v334_v9 }
 0x2b9   :  { %v344_v23 = vrot.slane %v343_v14, 1  ;;  %v337_v24 = vrot.slane %v336_v17, 1 }
 0x2bb   :  { %v345_v25 = vadd.f32 %v344_v23, %v343_v14  ;;  %v338_v26 = vadd.f32 %v337_v24, %v336_v17 }
 0x2bd   :  { %v359_v28 = vsel %vm115_vm6, %v338_v26, %v358_v27 }
 0x2be   :  { %v360_v30 = vsel %vm117_vm7, %v345_v25, %v359_v28 }
 0x2bf   :  { %362 = vst.msk [vmem:[#allocation7] sm:$0xff] %vm62_vm0, %v360_v30 }
 0x2c0   :  { %373 = dma.vmem_to_hbm [thread:$0]  %s369_s1, 128, %s371_s23, [#allocation4]  }
 0x2c1   :  { %485 = dma.done.wait [#allocation4], 128  }
 0x2c2   :  { %486 = vsyncadd [#allocation4], 4294967168 }
 0x2c3   :  { %378 = vsyncpa [#allocation3], 1 }
 0x2c4   :  { %379 = vsyncpa [#allocation6], 1 }
 0x2c5   :  { %380 = vsyncpa [#allocation4], 1 }

</bundles_post_ra>
